<compile_context>
chip_gen: v7x
topology: tpu7x:2x2x1
jax: 0.10.0
libtpu: 0.0.40
codegen_flags: <defaults>
</compile_context>

<pallas_src>
import functools

import numpy as np
import jax
import jax.numpy as jnp
from jax import lax
from jax.experimental import pallas as pl
from jax.experimental.pallas import tpu as pltpu
from jax.scipy.linalg import cholesky, solve_triangular

JITTER = 1e-4
_LANE = 128          # lane width
_SUB = 8             # sublane width
_COL_TILE = 512      # streamed-column tile (fits comfortably in VMEM on v5e/v6e/v7x)


def _round_up(n, m):
    return ((n + m - 1) // m) * m


def _pad2d(a, rows, cols):
    r, c = a.shape
    if r == rows and c == cols:
        return a
    return jnp.pad(a, ((0, rows - r), (0, cols - c)))


def _col_tiling(q):
    """(padded extent, tile) for a streamed column axis (last block dim)."""
    if q > _COL_TILE:
        return _round_up(q, _COL_TILE), _COL_TILE
    qp = _round_up(q, _LANE)          # keep output stores lane-dense
    return qp, qp


# ---------------------------------------------------------------------------
# Pallas kernel 1: RBF kernel matrix   K[i,j] = s2 * exp(-0.5 * ||x_i - z_j||^2 / ls^2)
# Streamed over rows of z (columns of K); x block is resident across the grid.
# ---------------------------------------------------------------------------
def _rbf_body(inv_ls, s2, x_ref, z_ref, o_ref):
    x = x_ref[...] * inv_ls                                       # (P, D)  scale once per tile
    z = z_ref[...] * inv_ls                                       # (tq, D)
    xx = jnp.sum(x * x, axis=-1, keepdims=True)                   # (P, 1)
    zz = jnp.sum(z * z, axis=-1, keepdims=True)                   # (tq, 1)
    xz = lax.dot_general(x, z, (((1,), (1,)), ((), ())),          # (P, tq)  MXU
                         preferred_element_type=jnp.float32)
    sq = jnp.maximum(xx + zz.T - 2.0 * xz, 0.0)
    o_ref[...] = s2 * jnp.exp(-0.5 * sq)                          # EUP exp


def rbf_kernel(x, z, lengthscale, variance):
    P, D = x.shape
    Q, _ = z.shape
    Pp = _round_up(P, _SUB)
    Qp, tq = _col_tiling(Q)
    xp = _pad2d(x.astype(jnp.float32), Pp, D)
    zp = _pad2d(z.astype(jnp.float32), Qp, D)
    body = functools.partial(_rbf_body, 1.0 / float(lengthscale), float(variance))
    out = pl.pallas_call(
        body,
        out_shape=jax.ShapeDtypeStruct((Pp, Qp), jnp.float32),
        grid=(Qp // tq,),
        in_specs=[
            pl.BlockSpec((Pp, D), lambda j: (0, 0)),      # resident rows
            pl.BlockSpec((tq, D), lambda j: (j, 0)),      # streamed columns
        ],
        out_specs=pl.BlockSpec((Pp, tq), lambda j: (0, j)),
        compiler_params=pltpu.CompilerParams(
            dimension_semantics=("parallel",)),
    )(xp, zp)
    return out[:P, :Q]


# ---------------------------------------------------------------------------
# Pallas kernel 2: fused streamed pass over A
#   B  = I + A @ A.T   (SYRK-style, no A.T in HBM, eye folded into init)
#   Ay = A @ y         (accumulated lane-dense as (1, M) = (A @ y).T)
# Grid reduces over the N (column) axis; outputs are resident accumulators.
# ---------------------------------------------------------------------------
def _apass_body(a_ref, y_ref, b_ref, ay_ref):
    k = pl.program_id(0)

    @pl.when(k == 0)
    def _():
        mp = b_ref.shape[0]
        row = lax.broadcasted_iota(jnp.int32, (mp, mp), 0)
        col = lax.broadcasted_iota(jnp.int32, (mp, mp), 1)
        b_ref[...] = (row == col).astype(jnp.float32)             # I folded in
        ay_ref[...] = jnp.zeros_like(ay_ref)

    a = a_ref[...]                                                # (Mp, tn)
    b_ref[...] += lax.dot_general(a, a, (((1,), (1,)), ((), ())),
                                  preferred_element_type=jnp.float32)
    ay_ref[...] += lax.dot_general(y_ref[...], a, (((0,), (1,)), ((), ())),
                                   preferred_element_type=jnp.float32)   # (1, Mp)


def fused_A_pass(A, y):
    M, N = A.shape
    Mp = _round_up(M, _SUB)
    Np, tn = _col_tiling(N)
    Ap = _pad2d(A.astype(jnp.float32), Mp, Np)
    yp = _pad2d(y.astype(jnp.float32), Np, 1)
    B, Ay = pl.pallas_call(
        _apass_body,
        out_shape=(jax.ShapeDtypeStruct((Mp, Mp), jnp.float32),
                   jax.ShapeDtypeStruct((1, Mp), jnp.float32)),
        grid=(Np // tn,),
        in_specs=[
            pl.BlockSpec((Mp, tn), lambda k: (0, k)),
            pl.BlockSpec((tn, 1), lambda k: (k, 0)),
        ],
        out_specs=(pl.BlockSpec((Mp, Mp), lambda k: (0, 0)),
                   pl.BlockSpec((1, Mp), lambda k: (0, 0))),
        compiler_params=pltpu.CompilerParams(
            dimension_semantics=("arbitrary",)),          # reduction axis
    )(Ap, yp)
    return B[:M, :M], Ay[0, :M][:, None]


# ---------------------------------------------------------------------------
# Pallas kernel 3: fused SGPR predictive head (lane-dense outputs, no transposes)
#   mean = (P.T @ c).T        -> (1, S)
#   var  = kss - colsum(Q^2) + colsum(P^2)   -> (1, S)
# Streamed over test-point columns.
# ---------------------------------------------------------------------------
def _predict_body(kss, q_ref, p_ref, c_ref, mean_ref, var_ref):
    q = q_ref[...]                                                # invLk_Kus        (Mp, ts)
    p = p_ref[...]                                                # invLb_invLk_Kus  (Mp, ts)
    c = c_ref[...]                                                # (Mp, 1)
    mean_ref[...] = lax.dot_general(c, p, (((0,), (0,)), ((), ())),
                                    preferred_element_type=jnp.float32)   # (1, ts)
    d1 = jnp.sum(q * q, axis=0, keepdims=True)                    # (1, ts)
    d2 = jnp.sum(p * p, axis=0, keepdims=True)                    # (1, ts)
    var_ref[...] = kss - d1 + d2


def predict_head(invLk_Kus, invLb_invLk_Kus, c, signal_variance):
    M, S = invLk_Kus.shape
    Mp = _round_up(M, _SUB)
    Sp, ts = _col_tiling(S)
    qp = _pad2d(invLk_Kus.astype(jnp.float32), Mp, Sp)
    pp = _pad2d(invLb_invLk_Kus.astype(jnp.float32), Mp, Sp)
    cp = _pad2d(c.astype(jnp.float32), Mp, 1)
    body = functools.partial(_predict_body, float(signal_variance))   # RBF diag is a constant
    mean, var = pl.pallas_call(
        body,
        out_shape=(jax.ShapeDtypeStruct((1, Sp), jnp.float32),
                   jax.ShapeDtypeStruct((1, Sp), jnp.float32)),
        grid=(Sp // ts,),
        in_specs=[
            pl.BlockSpec((Mp, ts), lambda j: (0, j)),
            pl.BlockSpec((Mp, ts), lambda j: (0, j)),
            pl.BlockSpec((Mp, 1), lambda j: (0, 0)),
        ],
        out_specs=(pl.BlockSpec((1, ts), lambda j: (0, j)),
                   pl.BlockSpec((1, ts), lambda j: (0, j))),
        compiler_params=pltpu.CompilerParams(
            dimension_semantics=("parallel",)),
    )(qp, pp, cp)
    return mean[0, :S][:, None], var[0, :S]


# ---------------------------------------------------------------------------
# OSGPR forward (is_sgpr == True branch -> sgpr_forward, diag=True)
# ---------------------------------------------------------------------------
def osgpr_forward(train_x, train_y, pseudo_x, test_x,
                  noise_variance, lengthscale, signal_variance, jitter=JITTER):
    M = pseudo_x.shape[0]
    sigma = jnp.sqrt(noise_variance)

    # kernel matrices (Pallas, column-tiled + pipelined)
    Kuu = rbf_kernel(pseudo_x, pseudo_x, lengthscale, signal_variance)   # (M, M)
    Kuf = rbf_kernel(pseudo_x, train_x, lengthscale, signal_variance)    # (M, N)
    Kus = rbf_kernel(pseudo_x, test_x, lengthscale, signal_variance)     # (M, S)  (direct; no Ksu.T)

    # TODO(synk): Cholesky / triangular solves are sequential small-matrix ops with no
    # clean Pallas TPU equivalent; they stay in plain JAX (glue, not the hot path).
    Lk = cholesky(Kuu + jitter * jnp.eye(M, dtype=jnp.float32), lower=True)
    A = solve_triangular(Lk, Kuf, lower=True) / sigma                    # (M, N)

    # single streamed pass over A:  B = I + A @ A.T  and  Ay = A @ y
    B, Ay = fused_A_pass(A, train_y)
    Lb = cholesky(B, lower=True)
    c = solve_triangular(Lb, Ay, lower=True) / sigma                     # (M, 1)

    invLk_Kus = solve_triangular(Lk, Kus, lower=True)                    # (M, S)
    invLb_invLk_Kus = solve_triangular(Lb, invLk_Kus, lower=True)        # (M, S)

    mean, var = predict_head(invLk_Kus, invLb_invLk_Kus, c, signal_variance)
    return mean, var


# ---------------------------------------------------------------------------
# pure-JAX reference (mirrors the PyTorch math) for verification
# ---------------------------------------------------------------------------
def _rbf_ref(x, z, ls, s2):
    sq = (jnp.sum(x * x, -1)[:, None] + jnp.sum(z * z, -1)[None, :]
          - 2.0 * x @ z.T)
    return s2 * jnp.exp(-0.5 * jnp.maximum(sq, 0.0) / ls ** 2)


def osgpr_forward_ref(train_x, train_y, pseudo_x, test_x,
                      noise_variance, lengthscale, signal_variance, jitter=JITTER):
    M = pseudo_x.shape[0]
    sigma = jnp.sqrt(noise_variance)
    Kuu = _rbf_ref(pseudo_x, pseudo_x, lengthscale, signal_variance)
    Kuf = _rbf_ref(pseudo_x, train_x, lengthscale, signal_variance)
    Ksu = _rbf_ref(test_x, pseudo_x, lengthscale, signal_variance)
    Lk = cholesky(Kuu + jitter * jnp.eye(M), lower=True)
    A = solve_triangular(Lk, Kuf, lower=True) / sigma
    B = jnp.eye(M) + A @ A.T
    Lb = cholesky(B, lower=True)
    c = solve_triangular(Lb, A @ train_y, lower=True) / sigma
    invLk_Kus = solve_triangular(Lk, Ksu.T, lower=True)
    invLb_invLk_Kus = solve_triangular(Lb, invLk_Kus, lower=True)
    mean = invLb_invLk_Kus.T @ c
    kss = jnp.full((test_x.shape[0],), signal_variance)
    var = kss - jnp.sum(invLk_Kus ** 2, 0) + jnp.sum(invLb_invLk_Kus ** 2, 0)
    return mean, var


if __name__ == "__main__":
    key = jax.random.PRNGKey(0)
    k1, k2, k3, k4 = jax.random.split(key, 4)

    D, N, M, S = 4, 16, 8, 8
    train_x = jax.random.normal(k1, (N, D), dtype=jnp.float32)
    train_y = jax.random.normal(k2, (N, 1), dtype=jnp.float32)
    pseudo_x = jax.random.normal(k3, (M, D), dtype=jnp.float32)
    test_x = jax.random.normal(k4, (S, D), dtype=jnp.float32)

    # deterministic hyperparameters; noise_variance stored through the softplus
    # constraint exactly like the torch module (free param -> transform).
    target_noise = 0.1
    free_noise = float(np.log(np.expm1(target_noise)))            # inv_softplus
    noise_variance = jax.nn.softplus(jnp.float32(free_noise))     # transform
    lengthscale = 1.0
    signal_variance = 1.0

    mean, var = osgpr_forward(train_x, train_y, pseudo_x, test_x,
                              noise_variance, lengthscale, signal_variance)
    jax.block_until_ready((mean, var))

    mean_ref, var_ref = osgpr_forward_ref(train_x, train_y, pseudo_x, test_x,
                                          noise_variance, lengthscale, signal_variance)
    np.testing.assert_allclose(np.asarray(mean), np.asarray(mean_ref), rtol=1e-4, atol=1e-5)
    np.testing.assert_allclose(np.asarray(var), np.asarray(var_ref), rtol=1e-4, atol=1e-5)

    print("KERNEL_OK")
</pallas_src>

<mosaic_0001>
module attributes {stable_mosaic.version = 11 : i64} {
  func.func @_rbf_body(%arg0: i32, %arg1: memref<8x4xf32, #tpu.memory_space<vmem>>, %arg2: memref<128x4xf32, #tpu.memory_space<vmem>>, %arg3: memref<8x128xf32, #tpu.memory_space<vmem>>) attributes {dimension_semantics = [#tpu.dimension_semantics<parallel>], iteration_bounds = array<i64: 1>, scalar_prefetch = 0 : i64, scratch_operands = 0 : i64, tpu.core_type = #tpu.core_type<tc>, window_params = [{pipeline_mode = #tpu.pipeline_mode<synchronous>, transform_indices = @transform_0, window_bounds = array<i64: 8, 4>}, {transform_indices = @transform_1, window_bounds = array<i64: 128, 4>}, {transform_indices = @transform_2, window_bounds = array<i64: 8, 128>}]} {
    %c0 = arith.constant 0 : index
    %c0_0 = arith.constant 0 : index
    %0 = vector.load %arg1[%c0, %c0_0] : memref<8x4xf32, #tpu.memory_space<vmem>>, vector<8x4xf32>
    %cst = arith.constant 1.000000e+00 : f32
    %1 = vector.broadcast %cst : f32 to vector<8x4xf32>
    %2 = arith.mulf %0, %1 : vector<8x4xf32>
    %c0_1 = arith.constant 0 : index
    %c0_2 = arith.constant 0 : index
    %3 = vector.load %arg2[%c0_1, %c0_2] : memref<128x4xf32, #tpu.memory_space<vmem>>, vector<128x4xf32>
    %cst_3 = arith.constant 1.000000e+00 : f32
    %4 = vector.broadcast %cst_3 : f32 to vector<128x4xf32>
    %5 = arith.mulf %3, %4 : vector<128x4xf32>
    %6 = arith.mulf %2, %2 : vector<8x4xf32>
    %cst_4 = arith.constant dense<0.000000e+00> : vector<8xf32>
    %7 = vector.multi_reduction <add>, %6, %cst_4 [1] : vector<8x4xf32> to vector<8xf32>
    %8 = vector.shape_cast %7 : vector<8xf32> to vector<8x1xf32>
    %9 = arith.mulf %5, %5 : vector<128x4xf32>
    %cst_5 = arith.constant dense<0.000000e+00> : vector<128xf32>
    %10 = vector.multi_reduction <add>, %9, %cst_5 [1] : vector<128x4xf32> to vector<128xf32>
    %11 = vector.shape_cast %10 : vector<128xf32> to vector<128x1xf32>
    %cst_6 = arith.constant dense<0.000000e+00> : vector<8x128xf32>
    %12 = tpu.matmul %2, %5, %cst_6 {dimension_numbers = #tpu.dot_dimension_numbers<[1], [1], [0], [0], [0, 0, 1, 0], [], []>} : vector<8x4xf32>, vector<128x4xf32>, vector<8x128xf32> -> vector<8x128xf32>
    %13 = tpu.transpose %11, [1, 0] : vector<128x1xf32> -> vector<1x128xf32>
    %14 = vector.broadcast %8 : vector<8x1xf32> to vector<8x128xf32>
    %15 = vector.broadcast %13 : vector<1x128xf32> to vector<8x128xf32>
    %16 = arith.addf %14, %15 : vector<8x128xf32>
    %cst_7 = arith.constant 2.000000e+00 : f32
    %17 = vector.broadcast %cst_7 : f32 to vector<8x128xf32>
    %18 = arith.mulf %17, %12 : vector<8x128xf32>
    %19 = arith.subf %16, %18 : vector<8x128xf32>
    %cst_8 = arith.constant 0.000000e+00 : f32
    %20 = vector.broadcast %cst_8 : f32 to vector<8x128xf32>
    %21 = arith.maximumf %19, %20 : vector<8x128xf32>
    %cst_9 = arith.constant -5.000000e-01 : f32
    %22 = vector.broadcast %cst_9 : f32 to vector<8x128xf32>
    %23 = arith.mulf %22, %21 : vector<8x128xf32>
    %24 = math.exp %23 : vector<8x128xf32>
    %cst_10 = arith.constant 1.000000e+00 : f32
    %25 = vector.broadcast %cst_10 : f32 to vector<8x128xf32>
    %26 = arith.mulf %25, %24 : vector<8x128xf32>
    %c0_11 = arith.constant 0 : index
    %c0_12 = arith.constant 0 : index
    %27 = vector.load %arg3[%c0_11, %c0_12] : memref<8x128xf32, #tpu.memory_space<vmem>>, vector<8x128xf32>
    tpu.vector_store %arg3[%c0_11, %c0_12], %26 {strides = array<i32>} : memref<8x128xf32, #tpu.memory_space<vmem>>, vector<8x128xf32>,
    return
  }
  func.func @transform_0(%arg0: i32) -> (i32, i32) {
    %c0_i32 = arith.constant 0 : i32
    %c0_i32_0 = arith.constant 0 : i32
    %c0_i32_1 = arith.constant 0 : i32
    return %c0_i32, %c0_i32_0 : i32, i32
  }
  func.func @transform_1(%arg0: i32) -> (i32, i32) {
    %c0_i32 = arith.constant 0 : i32
    %c0_i32_0 = arith.constant 0 : i32
    return %arg0, %c0_i32 : i32, i32
  }
  func.func @transform_2(%arg0: i32) -> (i32, i32) {
    %c0_i32 = arith.constant 0 : i32
    %c0_i32_0 = arith.constant 0 : i32
    return %c0_i32, %arg0 : i32, i32
  }
}

</mosaic_0001>

<bundles_post_ra>
// kernel: tpu_custom_call.1
= control target key start
LH: loop header
LB: loop body
LE: loop exit
PB: predicated region body
PF: predicated region fallthrough
CT: control target
= control target key end

     0   :  { %vm30_vm0 = vcmask 31744   ;;  %v408_v3 = vmov 0.0|0.0   ;;  %vm409_vm2 = vmmov 0   ;;  %v410_v14 = vmov 0.0   ;;  %s538_s0 = inlined_call_operand.vmem [shape: f32[8,4], index: 0, kind: input, shape index: {}]   ;;  %s539_s1 = inlined_call_operand.vmem [shape: f32[128,4], index: 1, kind: input, shape index: {}]   ;;  %s540_s2 = inlined_call_operand.hbm [shape: f32[8,128], index: 2, kind: output, shape index: {}]  }
   0x1   :  { %v13_v0 = vld [vmem:[%s539_s1] sm:$0xff]  ;;  %v14_v1 = vld [vmem:[%s539_s1 + $0x8] sm:$0xff]  ;;  %v15_v2 = vld [vmem:[%s539_s1 + $0x10] sm:$0xff]  ;;  %346 = vmatprep.subr.bf16.mxu0 %v408_v3  ;;  %343 = vmatprep.mubr.msk.f32.mxu0 %vm409_vm2, %v410_v14 }
   0x2   :  { %v347_v4 = vpack.c.bf16 %v14_v1, %v13_v0  ;;  %vm439_vm1 = vmpackc.low %vm30_vm0, %vm30_vm0  ;;  %v34_v6 = vmul.f32 %v13_v0, %v13_v0  ;;  %v35_v7 = vmul.f32 %v14_v1, %v14_v1  ;;  %v16_v8 = vld [vmem:[%s539_s1 + $0x18] sm:$0xff]  ;;  %v36_v9 = vmul.f32 %v15_v2, %v15_v2  ;;  %v17_v11 = vld [vmem:[%s539_s1 + $0x20] sm:$0xff] }
   0x3   :  { %v37_v10 = vmul.f32 %v16_v8, %v16_v8  ;;  %v18_v16 = vld [vmem:[%s539_s1 + $0x28] sm:$0xff]  ;;  %v38_v17 = vmul.f32 %v17_v11, %v17_v11  ;;  %v19_v20 = vld [vmem:[%s539_s1 + $0x30] sm:$0xff] }
   0x4   :  { %349 = vmatpush3.bf16.xpose.msk.msra.mxu0 %vm439_vm1, %v347_v4  ;;  %v50_v12 = vsel %vm30_vm0, %v34_v6, 0.0  ;;  %v56_v13 = vsel %vm30_vm0, %v36_v9, 0.0  ;;  %v53_v15 = vsel %vm30_vm0, %v35_v7, 0.0  ;;  %v39_v19 = vmul.f32 %v18_v16, %v18_v16 }
   0x5   :  { %51 = vadd.xlane.f32.xlu0 %v50_v12  ;;  %350 = vmatprep.subr.bf16.mxu0 %v408_v3  ;;  %v59_v18 = vsel %vm30_vm0, %v37_v10, 0.0 }
   0x6   :  { %57 = vadd.xlane.f32.xlu1 %v56_v13 }
   0x7   :  { %7 = vsyncpa [#allocation3], 0  ;;  %v351_v21 = vpack.c.bf16 %v16_v8, %v15_v2  ;;  %v62_v22 = vsel %vm30_vm0, %v38_v17, 0.0  ;;  %v20_v23 = vld [vmem:[%s539_s1 + $0x38] sm:$0xff]  ;;  %v40_v24 = vmul.f32 %v19_v20, %v19_v20  ;;  %v65_v25 = vsel %vm30_vm0, %v39_v19, 0.0  ;;  %v21_v27 = vld [vmem:[%s539_s1 + $0x40] sm:$0xff] }
   0x8   :  { %v41_v26 = vmul.f32 %v20_v23, %v20_v23  ;;  %v22_v29 = vld [vmem:[%s539_s1 + $0x48] sm:$0xff]  ;;  %v42_v30 = vmul.f32 %v21_v27, %v21_v27  ;;  %v23_v33 = vld [vmem:[%s539_s1 + $0x50] sm:$0xff]  ;;  %v355_v34 = vpack.c.bf16 %v18_v16, %v17_v11  ;;  %v24_v36 = vld [vmem:[%s539_s1 + $0x58] sm:$0xff]  ;;  %v359_v47 = vpack.c.bf16 %v20_v23, %v19_v20 }
   0x9   :  { %54 = vadd.xlane.f32.xlu0 %v53_v15  ;;  %v68_v28 = vsel %vm30_vm0, %v40_v24, 0.0  ;;  %v43_v32 = vmul.f32 %v22_v29, %v22_v29  ;;  %v44_v37 = vmul.f32 %v23_v33, %v23_v33  ;;  %v45_v39 = vmul.f32 %v24_v36, %v24_v36  ;;  %v25_v40 = vld [vmem:[%s539_s1 + $0x60] sm:$0xff]  ;;  %v26_v42 = vld [vmem:[%s539_s1 + $0x68] sm:$0xff]  ;;  %v27_v46 = vld [vmem:[%s539_s1 + $0x70] sm:$0xff] }
   0xa   :  { %60 = vadd.xlane.f32.xlu1 %v59_v18  ;;  %v71_v31 = vsel %vm30_vm0, %v41_v26, 0.0  ;;  %v74_v35 = vsel %vm30_vm0, %v42_v30, 0.0  ;;  %v46_v43 = vmul.f32 %v25_v40, %v25_v40  ;;  %v47_v45 = vmul.f32 %v26_v42, %v26_v42  ;;  %v28_v49 = vld [vmem:[%s539_s1 + $0x78] sm:$0xff]  ;;  %v12_v53 = vld [vmem:[%s538_s0] sm:$0xff]  ;;  %s411_s0 = smov [#allocation2]  }
   0xb   :  { %v77_v38 = vsel %vm30_vm0, %v43_v32, 0.0  ;;  %v80_v41 = vsel %vm30_vm0, %v44_v37, 0.0  ;;  %v83_v44 = vsel %vm30_vm0, %v45_v39, 0.0  ;;  %v48_v50 = vmul.f32 %v27_v46, %v27_v46  ;;  %s269_s1 = sshll.u32 %s411_s0, 4  ;;  %s270_s1 = int_to_ptr.vmem [resolvable:$true] %s269_s1 }
   0xc   :  { %353 = vmatpush3.bf16.xpose.msk.msra.mxu0 %vm439_vm1, %v351_v21  ;;  %v86_v48 = vsel %vm30_vm0, %v46_v43, 0.0  ;;  %v89_v51 = vsel %vm30_vm0, %v47_v45, 0.0  ;;  %v49_v52 = vmul.f32 %v28_v49, %v28_v49  ;;  %v29_v55 = vmul.f32 %v12_v53, %v12_v53  ;;  %s384_s15 = scalar_lea.vmem %s270_s1, 128  ;;  %p389_p1 = scmp.lt.s32.totalorder %s270_s1, %s270_s1 }
   0xd   :  { %354 = vmatprep.subr.bf16.mxu0 %v408_v3  ;;  %63 = vadd.xlane.f32.xlu0 %v62_v22  ;;  %v92_v54 = vsel %vm30_vm0, %v48_v50, 0.0  ;;  %v363_v57 = vpack.c.bf16 %v22_v29, %v21_v27  ;;  %v367_v59 = vpack.c.bf16 %v24_v36, %v23_v33  ;;  %v371_v60 = vpack.c.bf16 %v26_v42, %v25_v40  ;;  %p385_p0 = scmp.ne.s32.totalorder %s270_s1, %s384_s15  ;;  %p390_p2 = scmp.lt.s32.totalorder %s384_s15, %s384_s15 }
   0xe   :  { %66 = vadd.xlane.f32.xlu1 %v65_v25  ;;  %v95_v56 = vsel %vm30_vm0, %v49_v52, 0.0  ;;  %v31_v58 = vsel %vm30_vm0, %v29_v55, 0.0  ;;  %v375_v61 = vpack.c.bf16 %v28_v49, %v27_v46  ;;  %v251_v14 = vlaneseq }
   0xf   :  { %p391_p3 = por %p390_p2, %p389_p1 }
  0x10   :  { %v252_v15 = vshrl.u32 %v251_v14, 7 }
  0x11   :  { %69 = vadd.xlane.f32.xlu0 %v68_v28  ;;  %p392_p4 = pnand %p391_p3, %p385_p0 }
  0x12   :  { %72 = vadd.xlane.f32.xlu1 %v71_v31  ;;  %v253_v16 = vsub.s32 0, %v252_v15 }
  0x14   :  { %357 = vmatpush3.bf16.xpose.msk.msra.mxu0 %vm439_vm1, %v355_v34 }
  0x15   :  { %358 = vmatprep.subr.bf16.mxu0 %v408_v3  ;;  %75 = vadd.xlane.f32.xlu0 %v74_v35 }
  0x16   :  { %78 = vadd.xlane.f32.xlu1 %v77_v38 }
  0x19   :  { %81 = vadd.xlane.f32.xlu0 %v80_v41 }
  0x1a   :  { %84 = vadd.xlane.f32.xlu1 %v83_v44 }
  0x1c   :  { %361 = vmatpush3.bf16.xpose.msk.msra.mxu0 %vm439_vm1, %v359_v47 }
  0x1d   :  { %362 = vmatprep.subr.bf16.mxu0 %v408_v3  ;;  %87 = vadd.xlane.f32.xlu0 %v86_v48 }
  0x1e   :  { %90 = vadd.xlane.f32.xlu1 %v89_v51 }
  0x21   :  { %93 = vadd.xlane.f32.xlu0 %v92_v54 }
  0x22   :  { %96 = vadd.xlane.f32.xlu1 %v95_v56 }
  0x24   :  { %365 = vmatpush3.bf16.xpose.msk.msra.mxu0 %vm439_vm1, %v363_v57 }
  0x25   :  { %366 = vmatprep.subr.bf16.mxu0 %v408_v3  ;;  %32 = vadd.xlane.f32.xlu0 %v31_v58 }
  0x2c   :  { %369 = vmatpush3.bf16.xpose.msk.msra.mxu0 %vm439_vm1, %v367_v59 }
  0x2d   :  { %370 = vmatprep.subr.bf16.mxu0 %v408_v3 }
  0x34   :  { %373 = vmatpush3.bf16.xpose.msk.msra.mxu0 %vm439_vm1, %v371_v60 }
  0x35   :  { %374 = vmatprep.subr.bf16.mxu0 %v408_v3 }
  0x3c   :  { %377 = vmatpush3.bf16.xpose.msk.msra.mxu0 %vm439_vm1, %v375_v61 }
  0x43   :  { %344 = vmatmul.mubr.msk.f32.vlgmr.msra.gmra.mrb[0].mxu0 %vm30_vm0, %v12_v53 }
  0x92   :  { %v52_v62 = vpop.xlane.xlu0 %51 }
  0x93   :  { %219 = vxpose.xlu1.b32.start [1/16] (narrow) %v52_v62, 8  ;;  %v58_v0 = vpop.xlane.xlu1 %57 }
  0x96   :  { %v55_v63 = vpop.xlane.xlu0 %54 }
  0x97   :  { %220 = vxpose.xlu1.b32.cont [2/16] (narrow) %v55_v63, 8  ;;  %v61_v1 = vpop.xlane.xlu1 %60 }
  0x9a   :  { %v64_v2 = vpop.xlane.xlu0 %63 }
  0x9b   :  { %221 = vxpose.xlu1.b32.cont [3/16] (narrow) %v58_v0, 8  ;;  %v67_v4 = vpop.xlane.xlu1 %66 }
  0x9e   :  { %v70_v6 = vpop.xlane.xlu0 %69 }
  0x9f   :  { %222 = vxpose.xlu1.b32.cont [4/16] (narrow) %v61_v1, 8  ;;  %v73_v3 = vpop.xlane.xlu1 %72 }
  0xa2   :  { %v76_v5 = vpop.xlane.xlu0 %75 }
  0xa3   :  { %223 = vxpose.xlu1.b32.cont [5/16] (narrow) %v64_v2, 8  ;;  %v79_v7 = vpop.xlane.xlu1 %78 }
  0xa6   :  { %v82_v8 = vpop.xlane.xlu0 %81 }
  0xa7   :  { %224 = vxpose.xlu1.b32.cont [6/16] (narrow) %v67_v4, 8  ;;  %v85_v9 = vpop.xlane.xlu1 %84 }
  0xaa   :  { %v88_v10 = vpop.xlane.xlu0 %87 }
  0xab   :  { %225 = vxpose.xlu1.b32.cont [7/16] (narrow) %v70_v6, 8  ;;  %v91_v11 = vpop.xlane.xlu1 %90 }
  0xae   :  { %v94_v12 = vpop.xlane.xlu0 %93 }
  0xaf   :  { %226 = vxpose.xlu1.b32.cont [8/16] (narrow) %v73_v3, 8  ;;  %v97_v13 = vpop.xlane.xlu1 %96 }
  0xb2   :  { %v33_v18 = vpop.xlane.xlu0 %32 }
  0xb3   :  { %227 = vxpose.xlu1.b32.cont [9/16] (narrow) %v76_v5, 8 }
  0xb7   :  { %228 = vxpose.xlu1.b32.cont [10/16] (narrow) %v79_v7, 8 }
  0xbb   :  { %229 = vxpose.xlu1.b32.cont [11/16] (narrow) %v82_v8, 8 }
  0xbf   :  { %230 = vxpose.xlu1.b32.cont [12/16] (narrow) %v85_v9, 8 }
  0xc3   :  { %231 = vxpose.xlu1.b32.cont [13/16] (narrow) %v88_v10, 8 }
  0xc7   :  { %232 = vxpose.xlu1.b32.cont [14/16] (narrow) %v91_v11, 8 }
  0xcb   :  { %233 = vxpose.xlu1.b32.cont [15/16] (narrow) %v94_v12, 8 }
  0xcf   :  { %234 = vxpose.xlu1.b32.end [16/16] (narrow) %v97_v13, 8 }
 0x113   :  { %v235_v17 = vpop.trf.xlu1 }
 0x114   :  { %v254_v19 = vrot.slane %v235_v17, %v253_v16 }
 0x116   :  { %v215_v20 = vpop.f32.mrb[0].mxu0  ;;  %v255_v21 = vadd.f32 %v254_v19, %v33_v18 }
 0x117   :  { %v256_v22 = vmul.f32 2.0, %v215_v20  ;;  %v345_v23 = vpop.f32.mrb[1].mxu0 }
 0x119   :  { %v257_v24 = vsub.f32 %v255_v21, %v256_v22 }
 0x11b   :  { %v258_v25 = vmax.f32 %v257_v24, 0.0 }
 0x11d   :  { %v259_v26 = vmul.f32 -0.5, %v258_v25 }
 0x11f   :  { %v260_v27 = vmul.f32 1.442695, %v259_v26 }
 0x121   :  { %382 = vpow2.f32 %v260_v27 }
 0x12b   :  { %v383_v28 = vpop.eup %382 }
 0x12c   :  { %262 = vst [vmem:[#allocation2] sm:$0xff] %v383_v28 }
 0x12d   :  { %395 = shalt.err (!%p392_p4)
}
 0x12e   :  { %s396_s18 = scalar_lea.hbm %s540_s2, 128 }
 0x12f   :  { %p397_p5 = scmp.ne.s32.totalorder %s540_s2, %s396_s18  ;;  %p400_p6 = scmp.lt.u32.totalorder %s396_s18, %s540_s2 }
 0x131   :  { %p402_p7 = pnand %p400_p6, %p397_p5 }
 0x133   :  { %405 = shalt.err (!%p402_p7)
}
 0x134   :  { %272 = dma.vmem_to_hbm [thread:$0]  %s270_s1, 128, %s540_s2, [#allocation3]  }
 0x135   :  { %406 = dma.done.wait [#allocation3], 128  }
 0x136   :  { %407 = vsyncadd [#allocation3], 4294967168 }
 0x137   :  { %276 = vsyncpa [#allocation3], 1 }

</bundles_post_ra>
